<compile_context>
chip_gen: v7x
topology: tpu7x:2x2x1
jax: 0.10.0
libtpu: 0.0.40
codegen_flags: <defaults>
</compile_context>

<pallas_src>
import jax
import jax.numpy as jnp
from jax import lax
from jax.experimental import pallas as pl
from jax.experimental.pallas import tpu as pltpu

EPS = 1e-5  # nn.BatchNorm1d default


def _vmem_limit_bytes():
    """Generation-aware scoped-VMEM cap: ~70% of physical, capped at 96 MiB.
    v7x (64 MiB physical) -> ~45 MiB; v5e/v6e (128 MiB) -> ~90 MiB."""
    cap = 64 * 1024 * 1024
    try:
        cap = int(pltpu.get_tpu_info().vmem_capacity_bytes)
    except Exception:
        pass
    return min(int(0.70 * cap), 96 * 1024 * 1024)


def _pick_bt(B, L, Ci, Co, K, vmem_limit):
    """Largest batch tile that divides B, keeps an even grid (both v7x TCs fed when
    possible) and fits a double-buffered VMEM budget computed from real block bytes."""
    Lp = L // 2
    budget = int(0.55 * vmem_limit)

    def fits(bt):
        blk = 4 * bt * (L * Ci + L * Co + Lp * Co)                 # x / cout / p blocks (f32)
        fixed = 4 * (K * Ci * Co + Co + 2 * Co) + 4 * bt * L * Co  # weights+bias+stats + cbuf
        return 2 * blk + fixed <= budget                           # x2: double buffering

    divisors = sorted((d for d in range(1, B + 1) if B % d == 0), reverse=True)
    for bt in divisors:                      # prefer an even number of grid steps
        if (B // bt) % 2 == 0 and fits(bt):
            return bt
    for bt in divisors:                      # fall back: any tile that fits
        if fits(bt):
            return bt
    return 1


def _conv_pool_stats_kernel(x_ref, w_ref, b_ref, cout_ref, p_ref, sum_ref, m2_ref, cbuf_ref):
    """One batch tile: Conv1d (K accumulating depth-Ci dots, roll+mask shifted windows)
    + bias + ReLU + MaxPool1d(2) + per-tile BatchNorm partials (sum, M2)."""
    Bt, L, Ci = x_ref.shape
    K, _, Co = w_ref.shape
    pad = (K - 1) // 2
    Lp = L // 2
    R = Bt * L  # collapsed (batch, length) rows; L % 8 == 0 makes the reshapes free

    x2 = x_ref[...].reshape(R, Ci)                                    # (R, Ci)
    # within-batch position of every row (built 3-D, collapsed for free: no modulo needed)
    li = lax.broadcasted_iota(jnp.int32, (Bt, L, Ci), 1).reshape(R, Ci)

    acc = jnp.zeros((R, Co), jnp.float32)
    for k in range(K):                       # K tiny dots; MXU has huge slack here
        d = k - pad
        wk = w_ref[k]                        # (Ci, Co)
        if d == 0:
            xk = x2
        else:
            # shifted window: roll on the sublane axis (XLU), then zero the `pad` edge
            # rows -- the mask also kills any cross-batch / wrap-around rows.
            xs = pltpu.roll(x2, shift=(-d) % R, axis=0)               # xs[r] = x2[r + d]
            if d < 0:
                xk = jnp.where(li >= -d, xs, 0.0)
            else:
                xk = jnp.where(li < L - d, xs, 0.0)
        acc = acc + lax.dot_general(
            xk, wk, dimension_numbers=(((1,), (0,)), ((), ())),
            preferred_element_type=jnp.float32)

    # bias + ReLU; bias broadcasts directly from its (1, Co) block
    cout2 = jnp.maximum(acc + b_ref[...], 0.0)                        # (R, Co)
    cout_ref[...] = cout2.reshape(Bt, L, Co)   # output ref stays WRITE-ONLY (free writeback)
    cbuf_ref[...] = cout2                      # small VMEM scratch feeds the strided pool reads

    # MaxPool1d(kernel=2, stride=2): strided sublane reads from the scratch, not the output
    even = cbuf_ref[pl.ds(0, Bt * Lp, stride=2), :]
    odd = cbuf_ref[pl.ds(1, Bt * Lp, stride=2), :]
    p2 = jnp.maximum(even, odd)                                       # (Bt*Lp, Co)
    p_ref[...] = p2.reshape(Bt, Lp, Co)

    # per-tile BatchNorm partials: sum and M2 (sum of squared deviations from the TILE mean)
    # -> combined outside the grid with Chan's merge (numerically stable under tiling).
    cnt = jnp.float32(Bt * Lp)
    tsum = jnp.sum(p2, axis=0, keepdims=True)                         # (1, Co)
    dev = p2 - tsum / cnt
    tm2 = jnp.sum(dev * dev, axis=0, keepdims=True)                   # (1, Co)
    sum_ref[...] = tsum.reshape(1, 1, Co)
    m2_ref[...] = tm2.reshape(1, 1, Co)


def udown_block_1d_nlc(x_nlc, w_oik, bias, gamma, beta):
    """Channels-last entry point.  x_nlc: (B, L, Cin).  Returns (cout, pout) channels-last."""
    B, L, Ci = x_nlc.shape
    Co, Ci_w, K = w_oik.shape
    assert Ci_w == Ci and K % 2 == 1
    # L multiple of 16 keeps the in-kernel (Bt,L,*)<->(Bt*L,*) and pooled reshapes free.
    assert L % 16 == 0, "this kernel assumes L % 16 == 0"  # TODO(synk): general L via L-tiling
    Lp = L // 2

    vmem_limit = _vmem_limit_bytes()
    Bt = _pick_bt(B, L, Ci, Co, K, vmem_limit)
    n_bt = B // Bt

    x32 = x_nlc.astype(jnp.float32)
    # per-tap weight layout: w_kico[k, ci, co] = w[co, ci, k]  (tiny array, cheap glue)
    w_kico = jnp.transpose(w_oik, (2, 1, 0)).astype(jnp.float32)      # (K, Ci, Co)
    b2 = bias.reshape(1, Co).astype(jnp.float32)

    cout, p, tsum, tm2 = pl.pallas_call(
        _conv_pool_stats_kernel,
        grid=(n_bt,),
        in_specs=[
            pl.BlockSpec((Bt, L, Ci), lambda b: (b, 0, 0)),
            pl.BlockSpec((K, Ci, Co), lambda b: (0, 0, 0)),
            pl.BlockSpec((1, Co), lambda b: (0, 0)),
        ],
        out_specs=(
            pl.BlockSpec((Bt, L, Co), lambda b: (b, 0, 0)),
            pl.BlockSpec((Bt, Lp, Co), lambda b: (b, 0, 0)),
            pl.BlockSpec((1, 1, Co), lambda b: (b, 0, 0)),
            pl.BlockSpec((1, 1, Co), lambda b: (b, 0, 0)),
        ),
        out_shape=(
            jax.ShapeDtypeStruct((B, L, Co), jnp.float32),      # cout (post-ReLU)
            jax.ShapeDtypeStruct((B, Lp, Co), jnp.float32),     # pooled, pre-BN
            jax.ShapeDtypeStruct((n_bt, 1, Co), jnp.float32),   # per-tile sum
            jax.ShapeDtypeStruct((n_bt, 1, Co), jnp.float32),   # per-tile M2
        ),
        scratch_shapes=[pltpu.VMEM((Bt * L, Co), jnp.float32)],  # pooling intermediate
        compiler_params=pltpu.CompilerParams(
            dimension_semantics=("parallel",),
            vmem_limit_bytes=vmem_limit),
    )(x32, w_kico, b2)

    # ---- cross-tile BatchNorm reduction on tiny (n_bt, 1, Co) partials (Chan's merge) ----
    n_tile = jnp.float32(Bt * Lp)
    n_tot = jnp.float32(B * Lp)
    mean = jnp.sum(tsum, axis=0) / n_tot                                   # (1, Co)
    tile_mean = tsum / n_tile                                              # (n_bt, 1, Co)
    m2 = jnp.sum(tm2, axis=0) + n_tile * jnp.sum((tile_mean - mean[None, :, :]) ** 2, axis=0)
    var = m2 / n_tot                                                       # biased (training-mode)
    scale = gamma.reshape(1, Co).astype(jnp.float32) * lax.rsqrt(var + EPS)
    shift = beta.reshape(1, Co).astype(jnp.float32) - mean * scale

    # BN apply as plain XLA: trivially fusable elementwise op; avoids a second
    # micro-blocked Pallas pass that would re-read/re-write |p| from HBM.
    pout = p * scale[None, :, :] + shift[None, :, :]
    return cout, pout


def udown_block_1d(x_ncl, w_oik, bias, gamma, beta):
    """PyTorch-parity adapter (NCL in / NCL out).  The transposes below are the ONLY layout
    glue; a channels-last model should call udown_block_1d_nlc directly and avoid them."""
    x_nlc = jnp.transpose(x_ncl, (0, 2, 1))
    cout_nlc, pout_nlc = udown_block_1d_nlc(x_nlc, w_oik, bias, gamma, beta)
    return jnp.transpose(cout_nlc, (0, 2, 1)), jnp.transpose(pout_nlc, (0, 2, 1))


def reference_forward(x_ncl, w_oik, bias, gamma, beta):
    """Pure-JAX reference mirroring the PyTorch forward (NCL)."""
    B, Ci, L = x_ncl.shape
    Co, _, K = w_oik.shape
    pad = (K - 1) // 2
    cout = lax.conv_general_dilated(
        x_ncl, w_oik, window_strides=(1,), padding=((pad, pad),),
        dimension_numbers=("NCH", "OIH", "NCH"))
    cout = jax.nn.relu(cout + bias[None, :, None])
    p = jnp.max(cout.reshape(B, Co, L // 2, 2), axis=3)
    mean = jnp.mean(p, axis=(0, 2), keepdims=True)
    var = jnp.mean((p - mean) ** 2, axis=(0, 2), keepdims=True)
    pout = (p - mean) * lax.rsqrt(var + EPS) * gamma[None, :, None] + beta[None, :, None]
    return cout, pout


if __name__ == "__main__":
    B, Ci, Co, L, K = 4, 8, 16, 64, 3

    key = jax.random.PRNGKey(0)
    kx, kw, kb, kg, kbe = jax.random.split(key, 5)
    x = jax.random.normal(kx, (B, Ci, L), dtype=jnp.float32)
    # Deterministic synthetic parameters (shapes match nn.Conv1d / nn.BatchNorm1d).
    w = jax.random.normal(kw, (Co, Ci, K), dtype=jnp.float32) * 0.2
    b = jax.random.normal(kb, (Co,), dtype=jnp.float32) * 0.1
    gamma = 1.0 + 0.1 * jax.random.normal(kg, (Co,), dtype=jnp.float32)
    beta = 0.1 * jax.random.normal(kbe, (Co,), dtype=jnp.float32)

    cout, pout = jax.jit(udown_block_1d)(x, w, b, gamma, beta)
    jax.block_until_ready((cout, pout))

    cout_ref, pout_ref = reference_forward(x, w, b, gamma, beta)
    assert cout.shape == (B, Co, L) and pout.shape == (B, Co, L // 2)
    assert jnp.allclose(cout, cout_ref, atol=1e-4, rtol=1e-4)
    assert jnp.allclose(pout, pout_ref, atol=1e-3, rtol=1e-3)

    print("KERNEL_OK")
</pallas_src>

<mosaic_0001>
module attributes {stable_mosaic.version = 11 : i64} {
  func.func @_conv_pool_stats_kernel(%arg0: i32, %arg1: memref<2x64x8xf32, #tpu.memory_space<vmem>>, %arg2: memref<3x8x16xf32, #tpu.memory_space<vmem>>, %arg3: memref<1x16xf32, #tpu.memory_space<vmem>>, %arg4: memref<2x64x16xf32, #tpu.memory_space<vmem>>, %arg5: memref<2x32x16xf32, #tpu.memory_space<vmem>>, %arg6: memref<1x1x16xf32, #tpu.memory_space<vmem>>, %arg7: memref<1x1x16xf32, #tpu.memory_space<vmem>>, %arg8: memref<128x16xf32, #tpu.memory_space<vmem>>) attributes {dimension_semantics = [#tpu.dimension_semantics<parallel>], iteration_bounds = array<i64: 2>, scalar_prefetch = 0 : i64, scratch_operands = 1 : i64, tpu.core_type = #tpu.core_type<tc>, window_params = [{transform_indices = @transform_0, window_bounds = array<i64: 2, 64, 8>}, {pipeline_mode = #tpu.pipeline_mode<synchronous>, transform_indices = @transform_1, window_bounds = array<i64: 3, 8, 16>}, {pipeline_mode = #tpu.pipeline_mode<synchronous>, transform_indices = @transform_2, window_bounds = array<i64: 1, 16>}, {transform_indices = @transform_3, window_bounds = array<i64: 2, 64, 16>}, {transform_indices = @transform_4, window_bounds = array<i64: 2, 32, 16>}, {transform_indices = @transform_5, window_bounds = array<i64: 1, 1, 16>}, {transform_indices = @transform_6, window_bounds = array<i64: 1, 1, 16>}]} {
    %c0 = arith.constant 0 : index
    %c0_0 = arith.constant 0 : index
    %c0_1 = arith.constant 0 : index
    %0 = vector.load %arg1[%c0, %c0_0, %c0_1] : memref<2x64x8xf32, #tpu.memory_space<vmem>>, vector<2x64x8xf32>
    %1 = vector.shape_cast %0 : vector<2x64x8xf32> to vector<128x8xf32>
    %2 = tpu.iota {dimensions = array<i32: 1>} : vector<2x64x8xi32>
    %3 = vector.shape_cast %2 : vector<2x64x8xi32> to vector<128x8xi32>
    %cst = arith.constant 0.000000e+00 : f32
    %4 = vector.broadcast %cst : f32 to vector<128x16xf32>
    %c0_2 = arith.constant 0 : index
    %c0_3 = arith.constant 0 : index
    %c0_4 = arith.constant 0 : index
    %5 = vector.load %arg2[%c0_2, %c0_3, %c0_4] : memref<3x8x16xf32, #tpu.memory_space<vmem>>, vector<1x8x16xf32>
    %6 = vector.shape_cast %5 : vector<1x8x16xf32> to vector<8x16xf32>
    %c1_i32 = arith.constant 1 : i32
    %7 = tpu.dynamic_rotate %1 by %c1_i32 dim 0 : vector<128x8xf32>, i32 -> vector<128x8xf32>
    %c1_i32_5 = arith.constant 1 : i32
    %8 = vector.broadcast %c1_i32_5 : i32 to vector<128x8xi32>
    %9 = arith.cmpi sge, %3, %8 : vector<128x8xi32>
    %cst_6 = arith.constant 0.000000e+00 : f32
    %10 = vector.broadcast %cst_6 : f32 to vector<128x8xf32>
    %11 = arith.select %9, %7, %10 : vector<128x8xi1>, vector<128x8xf32>
    %cst_7 = arith.constant dense<0.000000e+00> : vector<128x16xf32>
    %12 = tpu.matmul %11, %6, %cst_7 {dimension_numbers = #tpu.dot_dimension_numbers<[1], [0], [0], [1], [0, 0, 1, 1], [], []>} : vector<128x8xf32>, vector<8x16xf32>, vector<128x16xf32> -> vector<128x16xf32>
    %13 = arith.addf %4, %12 : vector<128x16xf32>
    %c1 = arith.constant 1 : index
    %c0_8 = arith.constant 0 : index
    %c0_9 = arith.constant 0 : index
    %14 = vector.load %arg2[%c1, %c0_8, %c0_9] : memref<3x8x16xf32, #tpu.memory_space<vmem>>, vector<1x8x16xf32>
    %15 = vector.shape_cast %14 : vector<1x8x16xf32> to vector<8x16xf32>
    %cst_10 = arith.constant dense<0.000000e+00> : vector<128x16xf32>
    %16 = tpu.matmul %1, %15, %cst_10 {dimension_numbers = #tpu.dot_dimension_numbers<[1], [0], [0], [1], [0, 0, 1, 1], [], []>} : vector<128x8xf32>, vector<8x16xf32>, vector<128x16xf32> -> vector<128x16xf32>
    %17 = arith.addf %13, %16 : vector<128x16xf32>
    %c2 = arith.constant 2 : index
    %c0_11 = arith.constant 0 : index
    %c0_12 = arith.constant 0 : index
    %18 = vector.load %arg2[%c2, %c0_11, %c0_12] : memref<3x8x16xf32, #tpu.memory_space<vmem>>, vector<1x8x16xf32>
    %19 = vector.shape_cast %18 : vector<1x8x16xf32> to vector<8x16xf32>
    %c127_i32 = arith.constant 127 : i32
    %20 = tpu.dynamic_rotate %1 by %c127_i32 dim 0 : vector<128x8xf32>, i32 -> vector<128x8xf32>
    %c63_i32 = arith.constant 63 : i32
    %21 = vector.broadcast %c63_i32 : i32 to vector<128x8xi32>
    %22 = arith.cmpi slt, %3, %21 : vector<128x8xi32>
    %cst_13 = arith.constant 0.000000e+00 : f32
    %23 = vector.broadcast %cst_13 : f32 to vector<128x8xf32>
    %24 = arith.select %22, %20, %23 : vector<128x8xi1>, vector<128x8xf32>
    %cst_14 = arith.constant dense<0.000000e+00> : vector<128x16xf32>
    %25 = tpu.matmul %24, %19, %cst_14 {dimension_numbers = #tpu.dot_dimension_numbers<[1], [0], [0], [1], [0, 0, 1, 1], [], []>} : vector<128x8xf32>, vector<8x16xf32>, vector<128x16xf32> -> vector<128x16xf32>
    %26 = arith.addf %17, %25 : vector<128x16xf32>
    %c0_15 = arith.constant 0 : index
    %c0_16 = arith.constant 0 : index
    %27 = vector.load %arg3[%c0_15, %c0_16] : memref<1x16xf32, #tpu.memory_space<vmem>>, vector<1x16xf32>
    %28 = vector.broadcast %27 : vector<1x16xf32> to vector<128x16xf32>
    %29 = arith.addf %26, %28 : vector<128x16xf32>
    %cst_17 = arith.constant 0.000000e+00 : f32
    %30 = vector.broadcast %cst_17 : f32 to vector<128x16xf32>
    %31 = arith.maximumf %29, %30 : vector<128x16xf32>
    %32 = vector.shape_cast %31 : vector<128x16xf32> to vector<2x64x16xf32>
    %c0_18 = arith.constant 0 : index
    %c0_19 = arith.constant 0 : index
    %c0_20 = arith.constant 0 : index
    %33 = vector.load %arg4[%c0_18, %c0_19, %c0_20] : memref<2x64x16xf32, #tpu.memory_space<vmem>>, vector<2x64x16xf32>
    tpu.vector_store %arg4[%c0_18, %c0_19, %c0_20], %32 {strides = array<i32>} : memref<2x64x16xf32, #tpu.memory_space<vmem>>, vector<2x64x16xf32>,
    %c0_21 = arith.constant 0 : index
    %c0_22 = arith.constant 0 : index
    %34 = vector.load %arg8[%c0_21, %c0_22] : memref<128x16xf32, #tpu.memory_space<vmem>>, vector<128x16xf32>
    tpu.vector_store %arg8[%c0_21, %c0_22], %31 {strides = array<i32>} : memref<128x16xf32, #tpu.memory_space<vmem>>, vector<128x16xf32>,
    %c0_23 = arith.constant 0 : index
    %c0_24 = arith.constant 0 : index
    %35 = tpu.strided_load %arg8[%c0_23, %c0_24] {strides = array<i32: 2, 1>} : memref<128x16xf32, #tpu.memory_space<vmem>>, vector<64x16xf32>
    %c1_25 = arith.constant 1 : index
    %c0_26 = arith.constant 0 : index
    %36 = tpu.strided_load %arg8[%c1_25, %c0_26] {strides = array<i32: 2, 1>} : memref<128x16xf32, #tpu.memory_space<vmem>>, vector<64x16xf32>
    %37 = arith.maximumf %35, %36 : vector<64x16xf32>
    %38 = vector.shape_cast %37 : vector<64x16xf32> to vector<2x32x16xf32>
    %c0_27 = arith.constant 0 : index
    %c0_28 = arith.constant 0 : index
    %c0_29 = arith.constant 0 : index
    %39 = vector.load %arg5[%c0_27, %c0_28, %c0_29] : memref<2x32x16xf32, #tpu.memory_space<vmem>>, vector<2x32x16xf32>
    tpu.vector_store %arg5[%c0_27, %c0_28, %c0_29], %38 {strides = array<i32>} : memref<2x32x16xf32, #tpu.memory_space<vmem>>, vector<2x32x16xf32>,
    %cst_30 = arith.constant dense<0.000000e+00> : vector<16xf32>
    %40 = vector.multi_reduction <add>, %37, %cst_30 [0] : vector<64x16xf32> to vector<16xf32>
    %41 = vector.shape_cast %40 : vector<16xf32> to vector<1x16xf32>
    %cst_31 = arith.constant 6.400000e+01 : f32
    %42 = vector.broadcast %cst_31 : f32 to vector<1x16xf32>
    %43 = arith.divf %41, %42 : vector<1x16xf32>
    %44 = vector.broadcast %43 : vector<1x16xf32> to vector<64x16xf32>
    %45 = arith.subf %37, %44 : vector<64x16xf32>
    %46 = arith.mulf %45, %45 : vector<64x16xf32>
    %cst_32 = arith.constant dense<0.000000e+00> : vector<16xf32>
    %47 = vector.multi_reduction <add>, %46, %cst_32 [0] : vector<64x16xf32> to vector<16xf32>
    %48 = vector.shape_cast %47 : vector<16xf32> to vector<1x16xf32>
    %49 = vector.shape_cast %41 : vector<1x16xf32> to vector<1x1x16xf32>
    %c0_33 = arith.constant 0 : index
    %c0_34 = arith.constant 0 : index
    %c0_35 = arith.constant 0 : index
    %50 = vector.load %arg6[%c0_33, %c0_34, %c0_35] : memref<1x1x16xf32, #tpu.memory_space<vmem>>, vector<1x1x16xf32>
    tpu.vector_store %arg6[%c0_33, %c0_34, %c0_35], %49 {strides = array<i32>} : memref<1x1x16xf32, #tpu.memory_space<vmem>>, vector<1x1x16xf32>,
    %51 = vector.shape_cast %48 : vector<1x16xf32> to vector<1x1x16xf32>
    %c0_36 = arith.constant 0 : index
    %c0_37 = arith.constant 0 : index
    %c0_38 = arith.constant 0 : index
    %52 = vector.load %arg7[%c0_36, %c0_37, %c0_38] : memref<1x1x16xf32, #tpu.memory_space<vmem>>, vector<1x1x16xf32>
    tpu.vector_store %arg7[%c0_36, %c0_37, %c0_38], %51 {strides = array<i32>} : memref<1x1x16xf32, #tpu.memory_space<vmem>>, vector<1x1x16xf32>,
    return
  }
  func.func @transform_0(%arg0: i32) -> (i32, i32, i32) {
    %c0_i32 = arith.constant 0 : i32
    %c0_i32_0 = arith.constant 0 : i32
    %c0_i32_1 = arith.constant 0 : i32
    return %arg0, %c0_i32, %c0_i32_0 : i32, i32, i32
  }
  func.func @transform_1(%arg0: i32) -> (i32, i32, i32) {
    %c0_i32 = arith.constant 0 : i32
    %c0_i32_0 = arith.constant 0 : i32
    %c0_i32_1 = arith.constant 0 : i32
    %c0_i32_2 = arith.constant 0 : i32
    return %c0_i32, %c0_i32_0, %c0_i32_1 : i32, i32, i32
  }
  func.func @transform_2(%arg0: i32) -> (i32, i32) {
    %c0_i32 = arith.constant 0 : i32
    %c0_i32_0 = arith.constant 0 : i32
    %c0_i32_1 = arith.constant 0 : i32
    return %c0_i32, %c0_i32_0 : i32, i32
  }
  func.func @transform_3(%arg0: i32) -> (i32, i32, i32) {
    %c0_i32 = arith.constant 0 : i32
    %c0_i32_0 = arith.constant 0 : i32
    %c0_i32_1 = arith.constant 0 : i32
    return %arg0, %c0_i32, %c0_i32_0 : i32, i32, i32
  }
  func.func @transform_4(%arg0: i32) -> (i32, i32, i32) {
    %c0_i32 = arith.constant 0 : i32
    %c0_i32_0 = arith.constant 0 : i32
    %c0_i32_1 = arith.constant 0 : i32
    return %arg0, %c0_i32, %c0_i32_0 : i32, i32, i32
  }
  func.func @transform_5(%arg0: i32) -> (i32, i32, i32) {
    %c0_i32 = arith.constant 0 : i32
    %c0_i32_0 = arith.constant 0 : i32
    %c0_i32_1 = arith.constant 0 : i32
    return %arg0, %c0_i32, %c0_i32_0 : i32, i32, i32
  }
  func.func @transform_6(%arg0: i32) -> (i32, i32, i32) {
    %c0_i32 = arith.constant 0 : i32
    %c0_i32_0 = arith.constant 0 : i32
    %c0_i32_1 = arith.constant 0 : i32
    return %arg0, %c0_i32, %c0_i32_0 : i32, i32, i32
  }
}

</mosaic_0001>

<bundles_post_ra>
// kernel: udown_block_1d.1
= control target key start
LH: loop header
LB: loop body
LE: loop exit
PB: predicated region body
PF: predicated region fallthrough
CT: control target
= control target key end

     0   :  { %s1642_s21 = smov 0   ;;  %s2046_s0 = inlined_call_operand.vmem [shape: f32[4,64,8], index: 0, kind: input, shape index: {}]   ;;  %s2047_s1 = inlined_call_operand.vmem [shape: f32[3,8,16], index: 1, kind: input, shape index: {}]   ;;  %s2048_s2 = inlined_call_operand.vmem [shape: f32[1,16], index: 2, kind: input, shape index: {}]   ;;  %s2049_s3 = inlined_call_operand.vmem [shape: f32[4,64,16], index: 3, kind: output, shape index: {0}]   ;;  %s2050_s4 = inlined_call_operand.vmem [shape: f32[4,32,16], index: 4, kind: output, shape index: {1}]   ;;  %s2051_s5 = inlined_call_operand.vmem [shape: f32[2,1,16], index: 5, kind: output, shape index: {2}]   ;;  %s2052_s6 = inlined_call_operand.vmem [shape: f32[2,1,16], index: 6, kind: output, shape index: {3}]  }
   0x1 LB: > { %s1648_s22 = sadd.s32 4294967295, %s1605_s21   ;;  %p1362_p0 = scmp.ge.s32.totalorder %s1605_s21, 1  ;;  %s1605_s21 = sphi %s1642_s21, %s17_s21  }
   0x2   : > { %p221_p1 = scmp.lt.s32.totalorder %s1605_s21, 3 }
   0x4   : > { %p222_p2 = pnand %p1362_p0, %p221_p1 }
   0x5   : > { %v1372_v0 = vld [vmem:[%s2047_s1 + $0x8] sm:$0xff] (!%p222_p2)  ;;  %s1363_s25 = sshll.u32 (!%p222_p2), %s1648_s22, 1  ;;  %v317_v1 = vld [vmem:[%s2047_s1] sm:$0xff] (!%p222_p2)  ;;  %v1405_v2 = vld [vmem:[%s2047_s1 + $0x10] sm:$0xff] (!%p222_p2)  ;;  %v308_v3 = vlaneseq (!%p222_p2)  ;;  %vm377_vm0 = vcmask (!%p222_p2), 64512   ;;  %vm1071_vm5 = vcmask (!%p222_p2), 130048  }
   0x6   : > { %225 = sbr.rel (%p222_p2) target bundleno = 346 (0x15a), region = 32  ;;  %1479 = vmatprep.subr.mxu1 (!%p222_p2), %v1372_v0  ;;  %p266_p3 = scmp.lt.s32.totalorder (!%p222_p2), %s1363_s25, 3  ;;  %1505 = vmatprep.subr.mxu0 (!%p222_p2), %v317_v1  ;;  %vm1211_vm6 = vcmask (!%p222_p2), 122880  }
   0x7   : > { %1480 = vmatpush3.msra.mxu1 (!%p222_p2), %v1372_v0  ;;  %1506 = vmatpush3.msra.mxu0 (!%p222_p2), %v317_v1  ;;  %v1665_v4 = vshrl.u32 (!%p222_p2), %v308_v3, 7  ;;  %p286_p4 = scmp.lt.s32.totalorder (!%p222_p2), %s1648_s22, 1 }
   0x8   : > { %1557 = vmatprep.subr.mxu1 (!%p222_p2), %v317_v1  ;;  %1531 = vmatprep.subr.mxu0 (!%p222_p2), %v1405_v2 }
   0x9   : > { %vm334_vm1 = vcmp.lt.s32.totalorder (!%p222_p2), %v1665_v4, 1  ;;  %vm351_vm2 = vcmp.ge.s32.totalorder (!%p222_p2), %v1665_v4, 1  ;;  %vm782_vm3 = vcmp.lt.s32.totalorder (!%p222_p2), %v1665_v4, 7  ;;  %v316_v54 = vadd.s32 (!%p222_p2), 56, %v1665_v4  ;;  %v1898_v4 = vld [vmem:[%s2048_s2] ss:$0 sm:$0xff] (!%p222_p2) }
   0xb   : > { %vm806_vm4 = vcmp.lt.s32.totalorder (!%p222_p2), %v316_v54, 63 }
   0xd   : > { %s2054_s25 = smov (!%p266_p3, %s1363_s25), 3  ;;  %s2056_s22 = smov (!%p286_p4, %s1648_s22), 1 }
   0xe   : > { %s1425_s30 = sshll.u32 %s2054_s25, 6  ;;  %s1427_s15 = sshll.u32 %s2054_s25, 5 }
   0xf   : > { %s1672_s9 = scalar_lea.vmem %s2046_s0, %s1425_s30  ;;  %s1906_s14 = scalar_lea.vmem %s2049_s3, %s1425_s30 }
  0x10   : > { %v1675_v5 = vld [vmem:[%s1672_s9] sm:$0xff]  ;;  %v1678_v6 = vld [vmem:[%s1672_s9 + $0x8] sm:$0xff]  ;;  %v1681_v7 = vld [vmem:[%s1672_s9 + $0x10] sm:$0xff]  ;;  %s1929_s18 = scalar_lea.vmem %s2050_s4, %s1427_s15  ;;  %s288_s23 = scalar_lea.vmem %s2051_s5, %s2056_s22 }
  0x11   : > { %v318_v8 = vrot.slane %v1675_v5, 7  ;;  %1481 = vmatprep.mubr.msk.f32.mxu1 %vm377_vm0, %v1675_v5  ;;  %v319_v9 = vrot.slane %v1678_v6, 7  ;;  %v320_v10 = vrot.slane %v1681_v7, 7  ;;  %v1691_v11 = vld [vmem:[%s1672_s9 + $0x78] sm:$0xff]  ;;  %v1702_v14 = vld [vmem:[%s1672_s9 + $0x20] sm:$0xff]  ;;  %v1719_v21 = vld [vmem:[%s1672_s9 + $0x28] sm:$0xff]  ;;  %s291_s26 = scalar_lea.vmem %s2052_s6, %s2056_s22 }
  0x12   : > { %1482 = vmatmul.mubr.msk.f32.vlgmr.msra.gmra.mrb[0].mxu1 %vm377_vm0, %v1678_v6  ;;  %v1695_v12 = vld [vmem:[%s1672_s9 + $0x18] sm:$0xff]  ;;  %v333_v13 = vrot.slane %v1691_v11, 7  ;;  %v322_v19 = vrot.slane %v1702_v14, 7  ;;  %v1725_v22 = vld [vmem:[%s1672_s9 + $0x30] sm:$0xff]  ;;  %v323_v23 = vrot.slane %v1719_v21, 7  ;;  %v1741_v28 = vld [vmem:[%s1672_s9 + $0x40] sm:$0xff] }
  0x13   : > { %1484 = vmatprep.mubr.msk.f32.mxu1 %vm377_vm0, %v1681_v7  ;;  %1558 = vmatpush3.msra.mxu1 %v317_v1  ;;  %v321_v16 = vrot.slane %v1695_v12, 7  ;;  %v349_v17 = vsel %vm334_vm1, %v318_v8, %v319_v9  ;;  %v348_v20 = vsel %vm334_vm1, %v319_v9, %v320_v10  ;;  %v299_v25 = vld [vmem:[%s1672_s9 + $0x38] sm:$0xff]  ;;  %v324_v26 = vrot.slane %v1725_v22, 7  ;;  %v1756_v34 = vld [vmem:[%s1672_s9 + $0x48] sm:$0xff]  ;;  %v1760_v35 = vld [vmem:[%s1672_s9 + $0x50] sm:$0xff] }
  0x14   : > { %v350_v15 = vsel %vm334_vm1, %v333_v13, %v318_v8  ;;  %v325_v29 = vrot.slane %v299_v25, 7  ;;  %v345_v30 = vsel %vm334_vm1, %v322_v19, %v323_v23  ;;  %v766_v31 = vrot.slane %v1675_v5, 1  ;;  %v1776_v40 = vld [vmem:[%s1672_s9 + $0x58] sm:$0xff]  ;;  %v1780_v41 = vld [vmem:[%s1672_s9 + $0x60] sm:$0xff]  ;;  %v1795_v47 = vld [vmem:[%s1672_s9 + $0x68] sm:$0xff] }
  0x15   : > { %v359_v18 = vsel %vm351_vm2, %v350_v15, 0.0  ;;  %v347_v24 = vsel %vm334_vm1, %v320_v10, %v321_v16  ;;  %v346_v27 = vsel %vm334_vm1, %v321_v16, %v322_v19  ;;  %v767_v32 = vrot.slane %v1678_v6, 1  ;;  %v1799_v48 = vld [vmem:[%s1672_s9 + $0x70] sm:$0xff] }
  0x16   : > { %1485 = vmatmul.mubr.msk.f32.gmra.mrb[2].mxu1 %vm377_vm0, %v1695_v12  ;;  %1507 = vmatprep.mubr.msk.f32.mxu0 %vm377_vm0, %v359_v18  ;;  %v344_v33 = vsel %vm334_vm1, %v323_v23, %v324_v26  ;;  %v768_v36 = vrot.slane %v1681_v7, 1  ;;  %v343_v37 = vsel %vm334_vm1, %v324_v26, %v325_v29  ;;  %v769_v38 = vrot.slane %v1695_v12, 1 }
  0x17   : > { %1487 = vmatprep.mubr.msk.f32.mxu1 %vm377_vm0, %v1702_v14  ;;  %1508 = vmatmul.mubr.msk.f32.vlgmr.msra.gmra.mrb[0].mxu0 %vm377_vm0, %v349_v17  ;;  %v797_v39 = vsel %vm782_vm3, %v766_v31, %v767_v32  ;;  %v326_v42 = vrot.slane %v1741_v28, 7  ;;  %v770_v43 = vrot.slane %v1702_v14, 1  ;;  %v771_v45 = vrot.slane %v1719_v21, 1 }
  0x18   : > { %1532 = vmatpush3.msra.mxu0 %v1405_v2  ;;  %1510 = vmatprep.mubr.msk.f32.mxu0 %vm377_vm0, %v348_v20  ;;  %v796_v44 = vsel %vm782_vm3, %v767_v32, %v768_v36  ;;  %v795_v46 = vsel %vm782_vm3, %v768_v36, %v769_v38  ;;  %v772_v50 = vrot.slane %v1725_v22, 1  ;;  %v773_v53 = vrot.slane %v299_v25, 1 }
  0x19   : > { %v342_v49 = vsel %vm334_vm1, %v325_v29, %v326_v42  ;;  %v794_v51 = vsel %vm782_vm3, %v769_v38, %v770_v43  ;;  %v793_v52 = vsel %vm782_vm3, %v770_v43, %v771_v45  ;;  %v774_v55 = vrot.slane %v1741_v28, 1 }
  0x1a   : > { %1488 = vmatmul.mubr.msk.f32.gmra.mrb[4].mxu1 %vm377_vm0, %v1719_v21  ;;  %v327_v56 = vrot.slane %v1756_v34, 7  ;;  %v367_v57 = vsel %vm351_vm2, %v342_v49, 0.0  ;;  %v328_v58 = vrot.slane %v1760_v35, 7  ;;  %v792_v59 = vsel %vm782_vm3, %v771_v45, %v772_v50 }
  0x1b   : > { %1490 = vmatprep.mubr.msk.f32.mxu1 %vm377_vm0, %v1725_v22  ;;  %1511 = vmatmul.mubr.msk.f32.gmra.mrb[2].mxu0 %vm377_vm0, %v347_v24  ;;  %v775_v60 = vrot.slane %v1756_v34, 1  ;;  %v791_v61 = vsel %vm782_vm3, %v772_v50, %v773_v53  ;;  %v790_v62 = vsel %vm782_vm3, %v773_v53, %v774_v55  ;;  %v329_v63 = vrot.slane %v1776_v40, 7 }
  0x1c   : > { %1513 = vmatprep.mubr.msk.f32.mxu0 %vm377_vm0, %v346_v27  ;;  %v341_v0 = vsel %vm334_vm1, %v326_v42, %v327_v56  ;;  %v330_v1 = vrot.slane %v1780_v41, 7  ;;  %v340_v2 = vsel %vm334_vm1, %v327_v56, %v328_v58  ;;  %v776_v3 = vrot.slane %v1760_v35, 1 }
  0x1d   : > { %v814_v6 = vsel %vm806_vm4, %v790_v62, 0.0  ;;  %v777_v7 = vrot.slane %v1776_v40, 1  ;;  %v789_v8 = vsel %vm782_vm3, %v774_v55, %v775_v60  ;;  %v331_v9 = vrot.slane %v1795_v47, 7 }
  0x1e   : > { %1491 = vmatmul.mubr.msk.f32.gmra.mrb[6].mxu1 %vm377_vm0, %v299_v25  ;;  %v339_v10 = vsel %vm334_vm1, %v328_v58, %v329_v63  ;;  %v332_v12 = vrot.slane %v1799_v48, 7  ;;  %v338_v14 = vsel %vm334_vm1, %v329_v63, %v330_v1  ;;  %v778_v15 = vrot.slane %v1780_v41, 1 }
  0x1f   : > { %1493 = vmatprep.mubr.msk.f32.mxu1 %vm377_vm0, %v1741_v28  ;;  %1514 = vmatmul.mubr.msk.f32.gmra.mrb[4].mxu0 %vm377_vm0, %v345_v30  ;;  %v788_v16 = vsel %vm782_vm3, %v775_v60, %v776_v3  ;;  %v779_v17 = vrot.slane %v1795_v47, 1  ;;  %v787_v18 = vsel %vm782_vm3, %v776_v3, %v777_v7  ;;  %v337_v19 = vsel %vm334_vm1, %v330_v1, %v331_v9 }
  0x20   : > { %1516 = vmatprep.mubr.msk.f32.mxu0 %vm377_vm0, %v344_v33  ;;  %v336_v20 = vsel %vm334_vm1, %v331_v9, %v332_v12  ;;  %v780_v21 = vrot.slane %v1799_v48, 1  ;;  %v786_v22 = vsel %vm782_vm3, %v777_v7, %v778_v15  ;;  %v781_v24 = vrot.slane %v1691_v11, 1 }
  0x21   : > { %v785_v23 = vsel %vm782_vm3, %v778_v15, %v779_v17  ;;  %v335_v25 = vsel %vm334_vm1, %v332_v12, %v333_v13 }
  0x22   : > { %1494 = vmatmul.mubr.msk.f32.gmra.mrb[8].mxu1 %vm377_vm0, %v1756_v34  ;;  %v784_v26 = vsel %vm782_vm3, %v779_v17, %v780_v21  ;;  %v783_v27 = vsel %vm782_vm3, %v780_v21, %v781_v24 }
  0x23   : > { %1496 = vmatprep.mubr.msk.f32.mxu1 %vm377_vm0, %v1760_v35  ;;  %1517 = vmatmul.mubr.msk.f32.gmra.mrb[6].mxu0 %vm377_vm0, %v343_v37 }
  0x24   : > { %1533 = vmatprep.mubr.msk.f32.mxu0 %vm377_vm0, %v797_v39 }
  0x26   : > { %1497 = vmatmul.mubr.msk.f32.gmra.mrb[10].mxu1 %vm377_vm0, %v1776_v40 }
  0x27   : > { %1499 = vmatprep.mubr.msk.f32.mxu1 %vm377_vm0, %v1780_v41  ;;  %1534 = vmatmul.mubr.msk.f32.vlgmr.msra.gmra.mrb[0].mxu0 %vm377_vm0, %v796_v44 }
  0x28   : > { %1536 = vmatprep.mubr.msk.f32.mxu0 %vm377_vm0, %v795_v46 }
  0x2a   : > { %1500 = vmatmul.mubr.msk.f32.gmra.mrb[12].mxu1 %vm377_vm0, %v1795_v47 }
  0x2b   : > { %1502 = vmatprep.mubr.msk.f32.mxu1 %vm377_vm0, %v1799_v48  ;;  %1537 = vmatmul.mubr.msk.f32.gmra.mrb[2].mxu0 %vm377_vm0, %v794_v51 }
  0x2c   : > { %1539 = vmatprep.mubr.msk.f32.mxu0 %vm377_vm0, %v793_v52 }
  0x2e   : > { %1503 = vmatmul.mubr.msk.f32.gmra.mrb[14].mxu1 %vm377_vm0, %v1691_v11  ;;  %v798_v11 = vsel %vm782_vm3, %v781_v24, %v766_v31 }
  0x2f   : > { %1519 = vmatprep.mubr.msk.f32.mxu1 %vm377_vm0, %v367_v57  ;;  %1540 = vmatmul.mubr.msk.f32.gmra.mrb[4].mxu0 %vm377_vm0, %v792_v59  ;;  %v822_v13 = vsel %vm806_vm4, %v798_v11, 0.0 }
  0x30   : > { %1542 = vmatprep.mubr.msk.f32.mxu0 %vm377_vm0, %v791_v61 }
  0x32   : > { %1520 = vmatmul.mubr.msk.f32.vlgmr.msra.gmra.mrb[8].mxu1 %vm377_vm0, %v341_v0 }
  0x33   : > { %1522 = vmatprep.mubr.msk.f32.mxu1 %vm377_vm0, %v340_v2  ;;  %1543 = vmatmul.mubr.msk.f32.gmra.mrb[6].mxu0 %vm377_vm0, %v814_v6 }
  0x34   : > { %1545 = vmatprep.mubr.msk.f32.mxu0 %vm377_vm0, %v789_v8 }
  0x36   : > { %1523 = vmatmul.mubr.msk.f32.gmra.mrb[10].mxu1 %vm377_vm0, %v339_v10 }
  0x37   : > { %1525 = vmatprep.mubr.msk.f32.mxu1 %vm377_vm0, %v338_v14  ;;  %1546 = vmatmul.mubr.msk.f32.gmra.mrb[8].mxu0 %vm377_vm0, %v788_v16 }
  0x38   : > { %1548 = vmatprep.mubr.msk.f32.mxu0 %vm377_vm0, %v787_v18 }
  0x3a   : > { %1526 = vmatmul.mubr.msk.f32.gmra.mrb[12].mxu1 %vm377_vm0, %v337_v19 }
  0x3b   : > { %1528 = vmatprep.mubr.msk.f32.mxu1 %vm377_vm0, %v336_v20  ;;  %1549 = vmatmul.mubr.msk.f32.gmra.mrb[10].mxu0 %vm377_vm0, %v786_v22 }
  0x3c   : > { %1551 = vmatprep.mubr.msk.f32.mxu0 %vm377_vm0, %v785_v23 }
  0x3e   : > { %1529 = vmatmul.mubr.msk.f32.gmra.mrb[14].mxu1 %vm377_vm0, %v335_v25 }
  0x3f   : > { %1552 = vmatmul.mubr.msk.f32.gmra.mrb[12].mxu0 %vm377_vm0, %v784_v26 }
  0x40   : > { %1554 = vmatprep.mubr.msk.f32.mxu0 %vm377_vm0, %v783_v27 }
  0x43   : > { %1555 = vmatmul.mubr.msk.f32.gmra.mrb[14].mxu0 %vm377_vm0, %v822_v13 }
  0xe5   : > { %v1483_v28 = vpop.f32.mrb[0].mxu1 }
  0xe6   : > { %v492_v29 = vpop.f32.mrb[1].mxu1 }
  0xe9   : > { %v1486_v30 = vpop.f32.mrb[2].mxu1 }
  0xea   : > { %v502_v32 = vpop.f32.mrb[3].mxu1 }
  0xed   : > { %v1489_v33 = vpop.f32.mrb[4].mxu1 }
  0xee   : > { %v512_v34 = vpop.f32.mrb[5].mxu1 }
  0xf1   : > { %v1492_v35 = vpop.f32.mrb[6].mxu1 }
  0xf2   : > { %v522_v5 = vpop.f32.mrb[7].mxu1 }
  0xfa   : > { %v1535_v36 = vpop.f32.mrb[0].mxu0 }
  0xfb   : > { %v1559_v31 = vadd.f32 %v1535_v36, %v1483_v28  ;;  %v937_v37 = vpop.f32.mrb[1].mxu0 }
  0xfc   : > { %v1560_v38 = vadd.f32 %v937_v37, %v492_v29 }
  0xfd   : > { %v1040_v39 = vadd.f32 %v1559_v31, %v1898_v4 }
  0xfe   : > { %v1039_v40 = vadd.f32 %v1560_v38, %v1898_v4  ;;  %v1538_v41 = vpop.f32.mrb[2].mxu0 }
  0xff   : > { %v1056_v42 = vmax.f32 %v1040_v39, 0.0  ;;  %v1561_v43 = vadd.f32 %v1538_v41, %v1486_v30  ;;  %v947_v44 = vpop.f32.mrb[3].mxu0 }
 0x100   : > { %v1055_v45 = vmax.f32 %v1039_v40, 0.0  ;;  %v1562_v46 = vadd.f32 %v947_v44, %v502_v32 }
 0x101   : > { %1073 = vst.msk [vmem:[%s1906_s14 + $0x8] sm:$0xff] %vm1071_vm5, %v1056_v42  ;;  %1089 = vst.msk [vmem:[#allocation2 + $0x8] sm:$0xff] %vm1071_vm5, %v1056_v42  ;;  %v1042_v47 = vadd.f32 %v1561_v43, %v1898_v4 }
 0x102   : > { %1072 = vst.msk [vmem:[%s1906_s14] sm:$0xff] %vm1071_vm5, %v1055_v45  ;;  %1088 = vst.msk [vmem:[#allocation2] sm:$0xff] %vm1071_vm5, %v1055_v45  ;;  %v1041_v48 = vadd.f32 %v1562_v46, %v1898_v4  ;;  %v1541_v49 = vpop.f32.mrb[4].mxu0 }
 0x103   : > { %v1058_v50 = vmax.f32 %v1042_v47, 0.0  ;;  %v1563_v51 = vadd.f32 %v1541_v49, %v1489_v33  ;;  %v957_v52 = vpop.f32.mrb[5].mxu0 }
 0x104   : > { %v1057_v53 = vmax.f32 %v1041_v48, 0.0  ;;  %v1564_v54 = vadd.f32 %v957_v52, %v512_v34 }
 0x105   : > { %v1521_v55 = vpop.f32.mrb[8].mxu1  ;;  %1075 = vst.msk [vmem:[%s1906_s14 + $0x18] sm:$0xff] %vm1071_vm5, %v1058_v50  ;;  %1091 = vst.msk [vmem:[#allocation2 + $0x18] sm:$0xff] %vm1071_vm5, %v1058_v50  ;;  %v1044_v56 = vadd.f32 %v1563_v51, %v1898_v4 }
 0x106   : > { %v725_v57 = vpop.f32.mrb[9].mxu1  ;;  %1074 = vst.msk [vmem:[%s1906_s14 + $0x10] sm:$0xff] %vm1071_vm5, %v1057_v53  ;;  %1090 = vst.msk [vmem:[#allocation2 + $0x10] sm:$0xff] %vm1071_vm5, %v1057_v53  ;;  %v1043_v58 = vadd.f32 %v1564_v54, %v1898_v4  ;;  %v1544_v59 = vpop.f32.mrb[6].mxu0 }
 0x107   : > { %v1060_v60 = vmax.f32 %v1044_v56, 0.0  ;;  %v1565_v61 = vadd.f32 %v1544_v59, %v1492_v35  ;;  %v967_v62 = vpop.f32.mrb[7].mxu0 }
 0x108   : > { %v1059_v63 = vmax.f32 %v1043_v58, 0.0  ;;  %v1566_v0 = vadd.f32 %v967_v62, %v522_v5 }
 0x109   : > { %v1524_v1 = vpop.f32.mrb[10].mxu1  ;;  %v1104_v2 = vld [vmem:[#allocation2] ss:$2 sm:$0xff]  ;;  %v1120_v3 = vld [vmem:[#allocation2 + $0x1] ss:$2 sm:$0xff]  ;;  %1077 = vst.msk [vmem:[%s1906_s14 + $0x28] sm:$0xff] %vm1071_vm5, %v1060_v60  ;;  %v1046_v6 = vadd.f32 %v1565_v61, %v1898_v4 }
 0x10a   : > { %1093 = vst.msk [vmem:[#allocation2 + $0x28] sm:$0xff] %vm1071_vm5, %v1060_v60  ;;  %v735_v7 = vpop.f32.mrb[11].mxu1  ;;  %v1935_v8 = vmax.f32 %v1104_v2, %v1120_v3  ;;  %1076 = vst.msk [vmem:[%s1906_s14 + $0x20] sm:$0xff] %vm1071_vm5, %v1059_v63  ;;  %v1045_v9 = vadd.f32 %v1566_v0, %v1898_v4  ;;  %v1547_v10 = vpop.f32.mrb[8].mxu0 }
 0x10b   : > { %1092 = vst.msk [vmem:[#allocation2 + $0x20] sm:$0xff] %vm1071_vm5, %v1059_v63  ;;  %v1062_v12 = vmax.f32 %v1046_v6, 0.0  ;;  %v1567_v14 = vadd.f32 %v1547_v10, %v1521_v55  ;;  %v977_v15 = vpop.f32.mrb[9].mxu0 }
 0x10c   : > { %1143 = vst.msk [vmem:[%s1929_s18] sm:$0xff] %vm1071_vm5, %v1935_v8  ;;  %v1061_v16 = vmax.f32 %v1045_v9, 0.0  ;;  %v1568_v17 = vadd.f32 %v977_v15, %v725_v57  ;;  %v1151_v59 = vsel %vm1071_vm5, %v1935_v8, 0.0 }
 0x10d   : > { %v1527_v18 = vpop.f32.mrb[12].mxu1  ;;  %v1106_v19 = vld [vmem:[#allocation2 + $0x10] ss:$2 sm:$0xff]  ;;  %v1122_v20 = vld [vmem:[#allocation2 + $0x11] ss:$2 sm:$0xff]  ;;  %1079 = vst.msk [vmem:[%s1906_s14 + $0x38] sm:$0xff] %vm1071_vm5, %v1062_v12  ;;  %v1048_v21 = vadd.f32 %v1567_v14, %v1898_v4 }
 0x10e   : > { %1095 = vst.msk [vmem:[#allocation2 + $0x38] sm:$0xff] %vm1071_vm5, %v1062_v12  ;;  %v745_v22 = vpop.f32.mrb[13].mxu1  ;;  %v1948_v23 = vmax.f32 %v1106_v19, %v1122_v20  ;;  %1078 = vst.msk [vmem:[%s1906_s14 + $0x30] sm:$0xff] %vm1071_vm5, %v1061_v16  ;;  %v1047_v24 = vadd.f32 %v1568_v17, %v1898_v4  ;;  %v1550_v25 = vpop.f32.mrb[10].mxu0 }
 0x10f   : > { %1094 = vst.msk [vmem:[#allocation2 + $0x30] sm:$0xff] %vm1071_vm5, %v1061_v16  ;;  %v1064_v26 = vmax.f32 %v1048_v21, 0.0  ;;  %v1569_v27 = vadd.f32 %v1550_v25, %v1524_v1  ;;  %v987_v11 = vpop.f32.mrb[11].mxu0 }
 0x110   : > { %1144 = vst.msk [vmem:[%s1929_s18 + $0x8] sm:$0xff] %vm1071_vm5, %v1948_v23  ;;  %v1063_v13 = vmax.f32 %v1047_v24, 0.0  ;;  %v1570_v28 = vadd.f32 %v987_v11, %v735_v7  ;;  %v1152_v55 = vsel %vm1071_vm5, %v1948_v23, 0.0 }
 0x111   : > { %v1530_v29 = vpop.f32.mrb[14].mxu1  ;;  %1081 = vst.msk [vmem:[%s1906_s14 + $0x48] sm:$0xff] %vm1071_vm5, %v1064_v26  ;;  %1097 = vst.msk [vmem:[#allocation2 + $0x48] sm:$0xff] %vm1071_vm5, %v1064_v26  ;;  %v1050_v33 = vadd.f32 %v1569_v27, %v1898_v4  ;;  %v1153_v62 = vadd.f32 %v1152_v55, %v1151_v59 }
 0x112   : > { %v1108_v30 = vld [vmem:[#allocation2 + $0x20] ss:$2 sm:$0xff]  ;;  %v1124_v32 = vld [vmem:[#allocation2 + $0x21] ss:$2 sm:$0xff]  ;;  %v755_v34 = vpop.f32.mrb[15].mxu1  ;;  %1080 = vst.msk [vmem:[%s1906_s14 + $0x40] sm:$0xff] %vm1071_vm5, %v1063_v13  ;;  %v1049_v5 = vadd.f32 %v1570_v28, %v1898_v4 }
 0x113   : > { %v1961_v35 = vmax.f32 %v1108_v30, %v1124_v32  ;;  %1096 = vst.msk [vmem:[#allocation2 + $0x40] sm:$0xff] %vm1071_vm5, %v1063_v13  ;;  %v1553_v36 = vpop.f32.mrb[12].mxu0  ;;  %v1066_v31 = vmax.f32 %v1050_v33, 0.0 }
 0x114   : > { %v1571_v37 = vadd.f32 %v1553_v36, %v1527_v18  ;;  %v997_v38 = vpop.f32.mrb[13].mxu0  ;;  %v1065_v39 = vmax.f32 %v1049_v5, 0.0 }
 0x115   : > { %1145 = vst.msk [vmem:[%s1929_s18 + $0x10] sm:$0xff] %vm1071_vm5, %v1961_v35  ;;  %v1572_v40 = vadd.f32 %v997_v38, %v745_v22  ;;  %1083 = vst.msk [vmem:[%s1906_s14 + $0x58] sm:$0xff] %vm1071_vm5, %v1066_v31  ;;  %v1154_v60 = vsel %vm1071_vm5, %v1961_v35, 0.0 }
 0x116   : > { %v1110_v41 = vld [vmem:[#allocation2 + $0x30] ss:$2 sm:$0xff]  ;;  %v1126_v42 = vld [vmem:[#allocation2 + $0x31] ss:$2 sm:$0xff]  ;;  %1099 = vst.msk [vmem:[#allocation2 + $0x58] sm:$0xff] %vm1071_vm5, %v1066_v31  ;;  %v1052_v43 = vadd.f32 %v1571_v37, %v1898_v4  ;;  %1082 = vst.msk [vmem:[%s1906_s14 + $0x50] sm:$0xff] %vm1071_vm5, %v1065_v39  ;;  %v1155_v2 = vadd.f32 %v1154_v60, %v1153_v62 }
 0x117   : > { %v1974_v44 = vmax.f32 %v1110_v41, %v1126_v42  ;;  %1098 = vst.msk [vmem:[#allocation2 + $0x50] sm:$0xff] %vm1071_vm5, %v1065_v39  ;;  %v1051_v45 = vadd.f32 %v1572_v40, %v1898_v4  ;;  %v1556_v46 = vpop.f32.mrb[14].mxu0 }
 0x118   : > { %v1068_v47 = vmax.f32 %v1052_v43, 0.0  ;;  %v1573_v48 = vadd.f32 %v1556_v46, %v1530_v29  ;;  %v1007_v49 = vpop.f32.mrb[15].mxu0 }
 0x119   : > { %1146 = vst.msk [vmem:[%s1929_s18 + $0x18] sm:$0xff] %vm1071_vm5, %v1974_v44  ;;  %v1067_v50 = vmax.f32 %v1051_v45, 0.0  ;;  %v1574_v51 = vadd.f32 %v1007_v49, %v755_v34 }
 0x11a   : > { %v1112_v52 = vld [vmem:[#allocation2 + $0x40] ss:$2 sm:$0xff]  ;;  %v1128_v53 = vld [vmem:[#allocation2 + $0x41] ss:$2 sm:$0xff]  ;;  %1085 = vst.msk [vmem:[%s1906_s14 + $0x68] sm:$0xff] %vm1071_vm5, %v1068_v47  ;;  %1101 = vst.msk [vmem:[#allocation2 + $0x68] sm:$0xff] %vm1071_vm5, %v1068_v47  ;;  %v1054_v54 = vadd.f32 %v1573_v48, %v1898_v4 }
 0x11b   : > { %v1139_v56 = vmax.f32 %v1112_v52, %v1128_v53  ;;  %1084 = vst.msk [vmem:[%s1906_s14 + $0x60] sm:$0xff] %vm1071_vm5, %v1067_v50  ;;  %1100 = vst.msk [vmem:[#allocation2 + $0x60] sm:$0xff] %vm1071_vm5, %v1067_v50  ;;  %v1053_v57 = vadd.f32 %v1574_v51, %v1898_v4  ;;  %v1156_v4 = vsel %vm1071_vm5, %v1974_v44, 0.0 }
 0x11c   : > { %v1070_v58 = vmax.f32 %v1054_v54, 0.0  ;;  %v1157_v6 = vadd.f32 %v1156_v4, %v1155_v2 }
 0x11d   : > { %1147 = vst.msk [vmem:[%s1929_s18 + $0x20] sm:$0xff] %vm1071_vm5, %v1139_v56  ;;  %v1069_v61 = vmax.f32 %v1053_v57, 0.0  ;;  %v1158_v3 = vsel %vm1071_vm5, %v1139_v56, 0.0 }
 0x11e   : > { %v1114_v63 = vld [vmem:[#allocation2 + $0x50] ss:$2 sm:$0xff]  ;;  %v1130_v0 = vld [vmem:[#allocation2 + $0x51] ss:$2 sm:$0xff]  ;;  %1087 = vst.msk [vmem:[%s1906_s14 + $0x78] sm:$0xff] %vm1071_vm5, %v1070_v58  ;;  %1103 = vst.msk [vmem:[#allocation2 + $0x78] sm:$0xff] %vm1071_vm5, %v1070_v58  ;;  %v1159_v14 = vadd.f32 %v1158_v3, %v1157_v6 }
 0x11f   : > { %v1140_v1 = vmax.f32 %v1114_v63, %v1130_v0  ;;  %1086 = vst.msk [vmem:[%s1906_s14 + $0x70] sm:$0xff] %vm1071_vm5, %v1069_v61  ;;  %1102 = vst.msk [vmem:[#allocation2 + $0x70] sm:$0xff] %vm1071_vm5, %v1069_v61 }
 0x121   : > { %1148 = vst.msk [vmem:[%s1929_s18 + $0x28] sm:$0xff] %vm1071_vm5, %v1140_v1  ;;  %v1160_v10 = vsel %vm1071_vm5, %v1140_v1, 0.0 }
 0x122   : > { %v1116_v7 = vld [vmem:[#allocation2 + $0x60] ss:$2 sm:$0xff]  ;;  %v1132_v9 = vld [vmem:[#allocation2 + $0x61] ss:$2 sm:$0xff]  ;;  %v1161_v16 = vadd.f32 %v1160_v10, %v1159_v14 }
 0x123   : > { %v1141_v12 = vmax.f32 %v1116_v7, %v1132_v9 }
 0x125   : > { %1149 = vst.msk [vmem:[%s1929_s18 + $0x30] sm:$0xff] %vm1071_vm5, %v1141_v12  ;;  %v1162_v15 = vsel %vm1071_vm5, %v1141_v12, 0.0 }
 0x126   : > { %v1118_v17 = vld [vmem:[#allocation2 + $0x70] ss:$2 sm:$0xff]  ;;  %v1134_v18 = vld [vmem:[#allocation2 + $0x71] ss:$2 sm:$0xff]  ;;  %v1163_v20 = vadd.f32 %v1162_v15, %v1161_v16 }
 0x127   : > { %v1142_v19 = vmax.f32 %v1118_v17, %v1134_v18 }
 0x129   : > { %1150 = vst.msk [vmem:[%s1929_s18 + $0x38] sm:$0xff] %vm1071_vm5, %v1142_v19  ;;  %v1164_v21 = vsel %vm1071_vm5, %v1142_v19, 0.0 }
 0x12a   : > { %v1165_v22 = vadd.f32 %v1164_v21, %v1163_v20 }
 0x12c   : > { %v1166_v24 = vrot.slane %v1165_v22, 4 }
 0x12e   : > { %v1167_v25 = vadd.f32 %v1166_v24, %v1165_v22 }
 0x130   : > { %v1168_v26 = vrot.slane %v1167_v25, 2 }
 0x132   : > { %v1169_v27 = vadd.f32 %v1168_v26, %v1167_v25 }
 0x134   : > { %v1170_v11 = vrot.slane %v1169_v27, 1 }
 0x136   : > { %v1171_v13 = vadd.f32 %v1170_v11, %v1169_v27 }
 0x138   : > { %v1173_v28 = vmul.f32 0.015625, %v1171_v13  ;;  %1212 = vst.msk [vmem:[%s288_s23] sm:$0x1] %vm1211_vm6, %v1171_v13 }
 0x13a   : > { %v1174_v29 = vsub.f32 %v1935_v8, %v1173_v28  ;;  %v1175_v30 = vsub.f32 %v1948_v23, %v1173_v28  ;;  %v1176_v32 = vsub.f32 %v1961_v35, %v1173_v28  ;;  %v1177_v33 = vsub.f32 %v1974_v44, %v1173_v28 }
 0x13b   : > { %v1178_v34 = vsub.f32 %v1139_v56, %v1173_v28  ;;  %v1179_v37 = vsub.f32 %v1140_v1, %v1173_v28  ;;  %v1180_v42 = vsub.f32 %v1141_v12, %v1173_v28  ;;  %v1181_v45 = vsub.f32 %v1142_v19, %v1173_v28 }
 0x13c   : > { %v1182_v5 = vmul.f32 %v1174_v29, %v1174_v29  ;;  %v1183_v36 = vmul.f32 %v1175_v30, %v1175_v30  ;;  %v1184_v31 = vmul.f32 %v1176_v32, %v1176_v32  ;;  %v1185_v38 = vmul.f32 %v1177_v33, %v1177_v33 }
 0x13d   : > { %v1186_v43 = vmul.f32 %v1178_v34, %v1178_v34  ;;  %v1187_v35 = vmul.f32 %v1179_v37, %v1179_v37  ;;  %v1188_v47 = vmul.f32 %v1180_v42, %v1180_v42  ;;  %v1189_v50 = vmul.f32 %v1181_v45, %v1181_v45 }
 0x13e   : > { %v1190_v39 = vsel %vm1071_vm5, %v1182_v5, 0.0  ;;  %v1191_v40 = vsel %vm1071_vm5, %v1183_v36, 0.0  ;;  %v1193_v8 = vsel %vm1071_vm5, %v1184_v31, 0.0  ;;  %v1195_v44 = vsel %vm1071_vm5, %v1185_v38, 0.0 }
 0x13f   : > { %v1192_v41 = vadd.f32 %v1191_v40, %v1190_v39  ;;  %v1197_v48 = vsel %vm1071_vm5, %v1186_v43, 0.0  ;;  %v1199_v51 = vsel %vm1071_vm5, %v1187_v35, 0.0  ;;  %v1201_v53 = vsel %vm1071_vm5, %v1188_v47, 0.0 }
 0x140   : > { %v1203_v55 = vsel %vm1071_vm5, %v1189_v50, 0.0 }
 0x141   : > { %v1194_v23 = vadd.f32 %v1193_v8, %v1192_v41 }
 0x143   : > { %v1196_v46 = vadd.f32 %v1195_v44, %v1194_v23 }
 0x145   : > { %v1198_v49 = vadd.f32 %v1197_v48, %v1196_v46 }
 0x147   : > { %v1200_v52 = vadd.f32 %v1199_v51, %v1198_v49 }
 0x149   : > { %v1202_v54 = vadd.f32 %v1201_v53, %v1200_v52 }
 0x14b   : > { %v1204_v56 = vadd.f32 %v1203_v55, %v1202_v54 }
 0x14d   : > { %v1205_v57 = vrot.slane %v1204_v56, 4 }
 0x14f   : > { %v1206_v58 = vadd.f32 %v1205_v57, %v1204_v56 }
 0x151   : > { %v1207_v59 = vrot.slane %v1206_v58, 2 }
 0x153   : > { %v1208_v60 = vadd.f32 %v1207_v59, %v1206_v58 }
 0x155   : > { %v1209_v61 = vrot.slane %v1208_v60, 1 }
 0x157   : > { %v1210_v62 = vadd.f32 %v1209_v61, %v1208_v60 }
 0x159   : > { %1213 = vst.msk [vmem:[%s291_s26] sm:$0x1] %vm1211_vm6, %v1210_v62 }
 0x15a PF: > { %s17_s21 = sadd.s32 1, %s1605_s21  }
 0x15b   : > { %p14_p5 = scmp.ge.s32.totalorder %s17_s21, 4  }
 0x15d   :  { %16 = sbr.rel (!%p14_p5) target bundleno = 1 (0x1), region = 115 }

</bundles_post_ra>
